<compile_context>
chip_gen: v7x
topology: tpu7x:2x2x1
jax: 0.10.0
libtpu: 0.0.40
codegen_flags: <defaults>
</compile_context>

<pallas_src>
import jax
import jax.numpy as jnp
from jax.experimental import pallas as pl
from jax.experimental.pallas import tpu as pltpu
from typing import NamedTuple


def _round_up(x, m):
    return (x + m - 1) // m * m


def _cdiv(a, b):
    return (a + b - 1) // b


# ---------------------------------------------------------------------------
# Kernels
# ---------------------------------------------------------------------------
def _proj_kernel_fullk(x_ref, w_ref, b_ref, o_ref):
    # x_ref: (TM, K) bf16   w_ref: (K, TN) bf16   b_ref: (1, TN) f32
    # Single K block: f32 MXU accumulation, bias fused into the epilogue,
    # no accumulator scratch (saves tm*tn*4 B of VMEM and vld/vst slots).
    acc = jnp.dot(x_ref[...], w_ref[...], preferred_element_type=jnp.float32)
    o_ref[...] = (acc + b_ref[...]).astype(o_ref.dtype)


def _proj_kernel_ktiled(x_ref, w_ref, b_ref, o_ref, acc_ref):
    # Fallback when the hidden size is too large for a full-K panel.
    k = pl.program_id(2)

    @pl.when(k == 0)
    def _():
        acc_ref[...] = jnp.zeros_like(acc_ref)

    acc_ref[...] += jnp.dot(x_ref[...], w_ref[...],
                            preferred_element_type=jnp.float32)

    @pl.when(k == pl.num_programs(2) - 1)
    def _():
        o_ref[...] = (acc_ref[...] + b_ref[...]).astype(o_ref.dtype)


# ---------------------------------------------------------------------------
# One-time parameter preparation (outside the per-call path)
# ---------------------------------------------------------------------------
class ProjectorParams(NamedTuple):
    w: jax.Array            # (H_pad, P_pad) compute_dtype, transposed + padded
    b: jax.Array            # (1, P_pad) float32, padded
    H: int
    P: int
    H_pad: int
    P_pad: int
    tn: int
    tk: int
    tm_cap: int
    compute_dtype: object
    out_dtype: object
    vmem_limit: int


def _vmem_capacity_bytes():
    try:
        info = pltpu.get_tpu_info()
        cap = getattr(info, "vmem_capacity_bytes", None)
        if cap:
            return int(cap)
    except Exception:
        pass
    return 64 * 1024 * 1024  # conservative: v7x per-TC physical VMEM


def prepare_projector_params(weight, bias, *,
                             compute_dtype=jnp.bfloat16,
                             out_dtype=jnp.bfloat16,
                             tn_target=512, tk_target=2048):
    """weight: (P, H) [PyTorch nn.Linear layout]; bias: (P,)."""
    P, H = weight.shape
    assert bias.shape == (P,)
    in_b = jnp.dtype(compute_dtype).itemsize
    out_b = jnp.dtype(out_dtype).itemsize

    cap = _vmem_capacity_bytes()
    # ~40% of physical VMEM for the (double-buffered) working set; leave the
    # rest for the compiler.  v7x(64MiB)->~25MiB, v5e/v6e(128MiB)->~51MiB.
    budget = max(16 << 20, (cap * 2) // 5)
    vmem_limit = max(32 << 20, min((cap * 3) // 4, 100 << 20))

    # --- N (projection) tiling: lane-dense, minimal padding ------------------
    P_pad = _round_up(P, 128)
    n_j = _cdiv(P_pad, tn_target)
    tn = _round_up(_cdiv(P_pad, n_j), 128)
    P_pad = n_j * tn

    # --- K (hidden) tiling: prefer a single full-K panel ---------------------
    H_pad_full = _round_up(H, 128)
    fullk_fixed = 2 * in_b * H_pad_full * tn                # dbl-buffered W panel
    fullk_per_row = 2 * in_b * H_pad_full + 2 * out_b * tn  # dbl-buffered x + out
    tm_cap_fullk = (budget - fullk_fixed) // fullk_per_row if budget > fullk_fixed else 0

    if tm_cap_fullk >= 128:
        tk = H_pad_full
        H_pad = H_pad_full
        tm_cap = tm_cap_fullk
    else:
        # K-tiled fallback: pick tk near target that divides H_pad tightly.
        H_pad = _round_up(H, 128)
        n_k = _cdiv(H_pad, tk_target)
        tk = _round_up(_cdiv(H_pad, n_k), 128)
        H_pad = n_k * tk
        fixed = 2 * in_b * tk * tn
        per_row = 2 * in_b * tk + 2 * out_b * tn + 4 * tn   # + f32 accumulator
        tm_cap = (budget - fixed) // per_row if budget > fixed else 0

    tm_cap = max(16, min((tm_cap // 16) * 16, 8192))

    # --- one-time weight/bias preparation (cast + transpose + pad) -----------
    w_t = jnp.asarray(weight).astype(compute_dtype).T       # (H, P)
    if (H_pad, P_pad) != (H, P):
        w_t = jnp.pad(w_t, ((0, H_pad - H), (0, P_pad - P)))
    b2d = jnp.asarray(bias).astype(jnp.float32).reshape(1, P)
    if P_pad != P:
        b2d = jnp.pad(b2d, ((0, 0), (0, P_pad - P)))

    return ProjectorParams(w=w_t, b=b2d, H=H, P=P, H_pad=H_pad, P_pad=P_pad,
                           tn=tn, tk=tk, tm_cap=tm_cap,
                           compute_dtype=compute_dtype, out_dtype=out_dtype,
                           vmem_limit=vmem_limit)


# ---------------------------------------------------------------------------
# Per-call forward
# ---------------------------------------------------------------------------
def multi_modal_projector(image_features, params: ProjectorParams):
    """image_features: (..., H) -> (..., P)."""
    H, P = params.H, params.P
    H_pad, P_pad = params.H_pad, params.P_pad
    tn, tk = params.tn, params.tk

    lead_shape = image_features.shape[:-1]
    assert image_features.shape[-1] == H
    M = 1
    for d in lead_shape:
        M *= d

    # --- M tiling: minimal padding; weight streamed as few times as possible
    n_i = max(1, _cdiv(M, params.tm_cap))
    tm = _round_up(_cdiv(M, n_i), 16)
    M_pad = n_i * tm

    n_j = P_pad // tn
    n_k = H_pad // tk

    # v7x: keep both TensorCores busy - ensure >=2 blocks on a parallel axis.
    if n_i == 1 and n_j == 1 and M >= 256:
        n_i = 2
        tm = _round_up(_cdiv(M, 2), 16)
        M_pad = 2 * tm

    x2d = image_features.reshape(M, H).astype(params.compute_dtype)
    if (M_pad, H_pad) != (M, H):
        x2d = jnp.pad(x2d, ((0, M_pad - M), (0, H_pad - H)))

    cost = pl.CostEstimate(
        flops=2 * M * H * P,
        transcendentals=0,
        bytes_accessed=(x2d.size * x2d.dtype.itemsize
                        + params.w.size * params.w.dtype.itemsize
                        + params.b.size * params.b.dtype.itemsize
                        + M_pad * P_pad * jnp.dtype(params.out_dtype).itemsize))

    compiler_kwargs = dict(vmem_limit_bytes=params.vmem_limit)

    if n_k == 1:
        out2d = pl.pallas_call(
            _proj_kernel_fullk,
            out_shape=jax.ShapeDtypeStruct((M_pad, P_pad), params.out_dtype),
            grid_spec=pltpu.PrefetchScalarGridSpec(
                num_scalar_prefetch=0,
                grid=(n_i, n_j),
                in_specs=[
                    pl.BlockSpec((tm, tk), lambda i, j: (i, 0)),   # x panel
                    pl.BlockSpec((tk, tn), lambda i, j: (0, j)),   # W panel
                    pl.BlockSpec((1, tn), lambda i, j: (0, j)),    # bias tile
                ],
                out_specs=pl.BlockSpec((tm, tn), lambda i, j: (i, j)),
            ),
            compiler_params=pltpu.CompilerParams(
                dimension_semantics=("parallel", "parallel"),
                **compiler_kwargs),
            cost_estimate=cost,
        )(x2d, params.w, params.b)
    else:
        out2d = pl.pallas_call(
            _proj_kernel_ktiled,
            out_shape=jax.ShapeDtypeStruct((M_pad, P_pad), params.out_dtype),
            grid_spec=pltpu.PrefetchScalarGridSpec(
                num_scalar_prefetch=0,
                grid=(n_i, n_j, n_k),
                in_specs=[
                    pl.BlockSpec((tm, tk), lambda i, j, k: (i, k)),
                    pl.BlockSpec((tk, tn), lambda i, j, k: (k, j)),
                    pl.BlockSpec((1, tn), lambda i, j, k: (0, j)),
                ],
                out_specs=pl.BlockSpec((tm, tn), lambda i, j, k: (i, j)),
                scratch_shapes=[pltpu.VMEM((tm, tn), jnp.float32)],
            ),
            compiler_params=pltpu.CompilerParams(
                dimension_semantics=("parallel", "parallel", "arbitrary"),
                **compiler_kwargs),
            cost_estimate=cost,
        )(x2d, params.w, params.b)

    return out2d[:M, :P].reshape(*lead_shape, P)


if __name__ == "__main__":
    # Synthetic config: vision_tower.hidden_size=32, projection_dim=64
    B, S, H, P = 2, 8, 32, 64

    key = jax.random.PRNGKey(0)
    k_x, k_w, k_b = jax.random.split(key, 3)

    image_features = jax.random.normal(k_x, (B, S, H), dtype=jnp.float32)
    # nn.Linear weight shape is (out_features, in_features) = (P, H)
    weight = jax.random.normal(k_w, (P, H), dtype=jnp.float32) * 0.02
    bias = jax.random.normal(k_b, (P,), dtype=jnp.float32) * 0.02

    params = prepare_projector_params(weight, bias)          # one-time prep
    out = multi_modal_projector(image_features, params)
    out = jax.block_until_ready(out)

    assert out.shape == (B, S, P)
    assert out.dtype == jnp.bfloat16

    out_f32 = out.astype(jnp.float32)

    # Reference 1: same bf16-input / f32-accumulate / bf16-store math (tight).
    xb = image_features.astype(jnp.bfloat16).astype(jnp.float32)
    wb = weight.astype(jnp.bfloat16).astype(jnp.float32)
    ref_bf16 = (xb @ wb.T + bias).astype(jnp.bfloat16).astype(jnp.float32)
    assert jnp.allclose(out_f32, ref_bf16, atol=1e-3, rtol=1e-2)

    # Reference 2: exact f32 math (loose tolerance for bf16 quantization).
    ref_f32 = image_features @ weight.T + bias
    assert jnp.allclose(out_f32, ref_f32, atol=3e-2, rtol=3e-2)

    print("KERNEL_OK")
</pallas_src>

<mosaic_0001>
module attributes {stable_mosaic.version = 11 : i64} {
  func.func @_proj_kernel_fullk(%arg0: i32, %arg1: i32, %arg2: memref<16x128xbf16, #tpu.memory_space<vmem>>, %arg3: memref<128x128xbf16, #tpu.memory_space<vmem>>, %arg4: memref<1x128xf32, #tpu.memory_space<vmem>>, %arg5: memref<16x128xbf16, #tpu.memory_space<vmem>>) attributes {dimension_semantics = [#tpu.dimension_semantics<parallel>, #tpu.dimension_semantics<parallel>], iteration_bounds = array<i64: 1, 1>, scalar_prefetch = 0 : i64, scratch_operands = 0 : i64, tpu.core_type = #tpu.core_type<tc>, window_params = [{transform_indices = @transform_0, window_bounds = array<i64: 16, 128>}, {transform_indices = @transform_1, window_bounds = array<i64: 128, 128>}, {transform_indices = @transform_2, window_bounds = array<i64: 1, 128>}, {transform_indices = @transform_3, window_bounds = array<i64: 16, 128>}]} {
    %c0 = arith.constant 0 : index
    %c0_0 = arith.constant 0 : index
    %0 = vector.load %arg2[%c0, %c0_0] : memref<16x128xbf16, #tpu.memory_space<vmem>>, vector<16x128xbf16>
    %c0_1 = arith.constant 0 : index
    %c0_2 = arith.constant 0 : index
    %1 = vector.load %arg3[%c0_1, %c0_2] : memref<128x128xbf16, #tpu.memory_space<vmem>>, vector<128x128xbf16>
    %cst = arith.constant dense<0.000000e+00> : vector<16x128xf32>
    %2 = tpu.matmul %0, %1, %cst {dimension_numbers = #tpu.dot_dimension_numbers<[1], [0], [0], [1], [0, 0, 1, 1], [], []>} : vector<16x128xbf16>, vector<128x128xbf16>, vector<16x128xf32> -> vector<16x128xf32>
    %c0_3 = arith.constant 0 : index
    %c0_4 = arith.constant 0 : index
    %3 = vector.load %arg4[%c0_3, %c0_4] : memref<1x128xf32, #tpu.memory_space<vmem>>, vector<1x128xf32>
    %4 = vector.broadcast %3 : vector<1x128xf32> to vector<16x128xf32>
    %5 = arith.addf %2, %4 : vector<16x128xf32>
    %6 = arith.truncf %5 : vector<16x128xf32> to vector<16x128xbf16>
    %c0_5 = arith.constant 0 : index
    %c0_6 = arith.constant 0 : index
    %7 = vector.load %arg5[%c0_5, %c0_6] : memref<16x128xbf16, #tpu.memory_space<vmem>>, vector<16x128xbf16>
    tpu.vector_store %arg5[%c0_5, %c0_6], %6 {strides = array<i32>} : memref<16x128xbf16, #tpu.memory_space<vmem>>, vector<16x128xbf16>,
    return
  }
  func.func @transform_0(%arg0: i32, %arg1: i32) -> (i32, i32) {
    %c0_i32 = arith.constant 0 : i32
    %c0_i32_0 = arith.constant 0 : i32
    return %arg0, %c0_i32 : i32, i32
  }
  func.func @transform_1(%arg0: i32, %arg1: i32) -> (i32, i32) {
    %c0_i32 = arith.constant 0 : i32
    %c0_i32_0 = arith.constant 0 : i32
    return %c0_i32, %arg1 : i32, i32
  }
  func.func @transform_2(%arg0: i32, %arg1: i32) -> (i32, i32) {
    %c0_i32 = arith.constant 0 : i32
    %c0_i32_0 = arith.constant 0 : i32
    return %c0_i32, %arg1 : i32, i32
  }
  func.func @transform_3(%arg0: i32, %arg1: i32) -> (i32, i32) {
    %c0_i32 = arith.constant 0 : i32
    return %arg0, %arg1 : i32, i32
  }
}

</mosaic_0001>

<bundles_post_ra>
// kernel: tpu_custom_call.1
= control target key start
LH: loop header
LB: loop body
LE: loop exit
PB: predicated region body
PF: predicated region fallthrough
CT: control target
= control target key end

     0   :  { %8 = vsyncpa [#allocation3], 0  ;;  %s403_s0 = inlined_call_operand.hbm [shape: bf16[16,128], index: 0, kind: input, shape index: {}]   ;;  %s404_s1 = inlined_call_operand.hbm [shape: bf16[128,128], index: 1, kind: input, shape index: {}]   ;;  %s405_s2 = inlined_call_operand.vmem [shape: f32[1,128], index: 2, kind: input, shape index: {}]   ;;  %s406_s3 = inlined_call_operand.hbm [shape: bf16[16,128], index: 3, kind: output, shape index: {}]  }
   0x1   :  { %9 = vsyncpa [#allocation6], 0 }
   0x2   :  { %10 = vsyncpa [#allocation4], 0  ;;  %s328_s12 = smov [#allocation2]   ;;  %s256_s16 = scalar_lea.hbm %s403_s0, 128 }
   0x3   :  { %s16_s13 = sshll.u32 %s328_s12, 4  ;;  %p257_p0 = scmp.ne.s32.totalorder %s403_s0, %s256_s16  ;;  %s17_s13 = int_to_ptr.vmem [resolvable:$true] %s16_s13 }
   0x4   :  { %p260_p1 = scmp.lt.u32.totalorder %s256_s16, %s403_s0 }
   0x6   :  { %p262_p2 = pnand %p260_p1, %p257_p0 }
   0x8   :  { %265 = shalt.err (!%p262_p2)
}
   0x9   :  { %s266_s21 = scalar_lea.vmem %s17_s13, 128  ;;  %p271_p4 = scmp.lt.s32.totalorder %s17_s13, %s17_s13 }
   0xa   :  { %p267_p3 = scmp.ne.s32.totalorder %s17_s13, %s266_s21  ;;  %p272_p5 = scmp.lt.s32.totalorder %s266_s21, %s266_s21 }
   0xc   :  { %p273_p6 = por %p272_p5, %p271_p4 }
   0xe   :  { %p274_p7 = pnand %p273_p6, %p267_p3 }
  0x10   :  { %277 = shalt.err (!%p274_p7)
}
  0x11   :  { %s329_s22 = smov 64   ;;  %s330_s23 = smov 4  }
  0x12   :  { %22 = dma.hbm_to_vmem [thread:$0]  %s403_s0, 128, %s17_s13, [#allocation3], %s329_s22, %s329_s22, %s330_s23  }
  0x13   :  { %s331_s26 = smov [#allocation5]   ;;  %s278_s30 = scalar_lea.hbm %s404_s1, 1024 }
  0x14   :  { %s28_s27 = sshll.u32 %s331_s26, 4  ;;  %p279_p8 = scmp.ne.s32.totalorder %s404_s1, %s278_s30  ;;  %s29_s27 = int_to_ptr.vmem [resolvable:$true] %s28_s27 }
  0x15   :  { %p282_p9 = scmp.lt.u32.totalorder %s278_s30, %s404_s1 }
  0x17   :  { %p284_p10 = pnand %p282_p9, %p279_p8 }
  0x19   :  { %287 = shalt.err (!%p284_p10)
}
  0x1a   :  { %s288_s8 = scalar_lea.vmem %s29_s27, 1024  ;;  %p293_p12 = scmp.lt.s32.totalorder %s29_s27, %s29_s27 }
  0x1b   :  { %p289_p11 = scmp.ne.s32.totalorder %s29_s27, %s288_s8  ;;  %p294_p13 = scmp.lt.s32.totalorder %s288_s8, %s288_s8 }
  0x1d   :  { %p295_p0 = por %p294_p13, %p293_p12 }
  0x1f   :  { %p296_p1 = pnand %p295_p0, %p289_p11 }
  0x21   :  { %299 = shalt.err (!%p296_p1)
}
  0x22   :  { %34 = dma.hbm_to_vmem [thread:$0]  %s404_s1, 1024, %s29_s27, [#allocation6], %s329_s22, %s329_s22, %s330_s23  }
  0x23   :  { %322 = dma.done.wait [#allocation3], 128  }
  0x24   :  { %323 = vsyncadd [#allocation3], 4294967168 }
  0x25   :  { %324 = dma.done.wait [#allocation6], 1024  }
  0x26   :  { %325 = vsyncadd [#allocation6], 4294966272  ;;  %v332_v0 = vmov 0.0   ;;  %vm333_vm0 = vmmov 0   ;;  %v247_v1 = vld [vmem:[#allocation5] sm:$0xff]   ;;  %v248_v2 = vld [vmem:[#allocation5 + $0x8] sm:$0xff]  }
  0x27   :  { %220 = vmatprep.subr.bf16.mxu0 %v332_v0  ;;  %236 = vmatprep.mubr.msk.bf16.mxu0 %vm333_vm0, %v332_v0  ;;  %v249_v3 = vld [vmem:[#allocation5 + $0x10] sm:$0xff]   ;;  %v250_v4 = vld [vmem:[#allocation5 + $0x18] sm:$0xff]   ;;  %v251_v5 = vld [vmem:[#allocation5 + $0x20] sm:$0xff]   ;;  %s334_s11 = smov [#allocation7]  }
  0x28   :  { %221 = vmatpush3.bf16.msra.mxu0 %v247_v1  ;;  %v252_v6 = vld [vmem:[#allocation5 + $0x28] sm:$0xff]   ;;  %v253_v7 = vld [vmem:[#allocation5 + $0x30] sm:$0xff]   ;;  %v254_v8 = vld [vmem:[#allocation5 + $0x38] sm:$0xff]   ;;  %s179_s12 = sshll.u32 %s334_s11, 4  ;;  %s180_s12 = int_to_ptr.vmem [resolvable:$true] %s179_s12 }
  0x29   :  { %222 = vmatprep.subr.bf16.mxu0 %v332_v0  ;;  %v255_v9 = vld [vmem:[#allocation2] sm:$0xff]   ;;  %s300_s13 = scalar_lea.vmem %s180_s12, 128  ;;  %p305_p3 = scmp.lt.s32.totalorder %s180_s12, %s180_s12 }
  0x2a   :  { %v192_v10 = vld [vmem:[%s405_s2] ss:$0 sm:$0xff]  ;;  %p301_p2 = scmp.ne.s32.totalorder %s180_s12, %s300_s13  ;;  %p306_p4 = scmp.lt.s32.totalorder %s300_s13, %s300_s13 }
  0x2c   :  { %223 = vmatpush3.bf16.msra.mxu0 %v248_v2  ;;  %p307_p5 = por %p306_p4, %p305_p3 }
  0x2d   :  { %224 = vmatprep.subr.bf16.mxu0 %v332_v0 }
  0x2e   :  { %p308_p6 = pnand %p307_p5, %p301_p2 }
  0x30   :  { %225 = vmatpush3.bf16.msra.mxu0 %v249_v3 }
  0x31   :  { %226 = vmatprep.subr.bf16.mxu0 %v332_v0 }
  0x34   :  { %227 = vmatpush3.bf16.msra.mxu0 %v250_v4 }
  0x35   :  { %228 = vmatprep.subr.bf16.mxu0 %v332_v0 }
  0x38   :  { %229 = vmatpush3.bf16.msra.mxu0 %v251_v5 }
  0x39   :  { %230 = vmatprep.subr.bf16.mxu0 %v332_v0 }
  0x3c   :  { %231 = vmatpush3.bf16.msra.mxu0 %v252_v6 }
  0x3d   :  { %232 = vmatprep.subr.bf16.mxu0 %v332_v0 }
  0x40   :  { %233 = vmatpush3.bf16.msra.mxu0 %v253_v7 }
  0x41   :  { %234 = vmatprep.subr.bf16.mxu0 %v332_v0 }
  0x44   :  { %235 = vmatpush3.bf16.msra.mxu0 %v254_v8 }
  0x47   :  { %237 = vmatmul.mubr.bf16.vlgmr.msra.gmra.mrb[0].mxu0 %v255_v9 }
 0x11a   :  { %v157_v11 = vpop.f32.mrb[0].mxu0 }
 0x11b   :  { %v238_v12 = vpop.f32.mrb[1].mxu0  ;;  %v158_v14 = vadd.f32 %v192_v10, %v157_v11 }
 0x11c   :  { %v160_v13 = vpop.f32.mrb[2].mxu0 }
 0x11d   :  { %v161_v15 = vadd.f32 %v192_v10, %v160_v13  ;;  %v239_v16 = vpop.f32.mrb[3].mxu0 }
 0x11f   :  { %v209_v17 = vpack.c.bf16 %v161_v15, %v158_v14 }
 0x121   :  { %210 = vst [vmem:[#allocation7] sm:$0xff] %v209_v17  }
 0x122   :  { %311 = shalt.err (!%p308_p6)
}
 0x123   :  { %s312_s15 = scalar_lea.hbm %s406_s3, 128 }
 0x124   :  { %p313_p7 = scmp.ne.s32.totalorder %s406_s3, %s312_s15  ;;  %p316_p8 = scmp.lt.u32.totalorder %s312_s15, %s406_s3 }
 0x126   :  { %p318_p9 = pnand %p316_p8, %p313_p7 }
 0x128   :  { %321 = shalt.err (!%p318_p9)
}
 0x129   :  { %185 = dma.vmem_to_hbm [thread:$0]  %s180_s12, 128, %s406_s3, [#allocation4], %s329_s22, %s329_s22, %s330_s23  }
 0x12a   :  { %326 = dma.done.wait [#allocation4], 128  }
 0x12b   :  { %327 = vsyncadd [#allocation4], 4294967168 }
 0x12c   :  { %189 = vsyncpa [#allocation3], 1 }
 0x12d   :  { %190 = vsyncpa [#allocation6], 1 }
 0x12e   :  { %191 = vsyncpa [#allocation4], 1 }

</bundles_post_ra>
